<compile_context>
chip_gen: v5e
topology: v5e:2x2
jax: 0.10.0
libtpu: 0.0.40
codegen_flags: <defaults>
</compile_context>

<pallas_src>
import math

import jax
import jax.numpy as jnp
from jax.experimental import pallas as pl
from jax.experimental.pallas import tpu as pltpu


_MAX_DMA_CHUNKS = 8           # keep up to this many DMA descriptors in flight
_MIN_CHUNK_BYTES = 1 << 20    # don't bother splitting below ~1 MiB per chunk
_SUBLANE = {4: 8, 2: 16, 1: 32}   # sublane granularity per itemsize
_MAX_LANES = 4096                 # lane-dense last-dim cap (multiple of 128)


def _pick_lanes(total: int) -> int:
    """Largest multiple of 128 that divides `total`, capped at _MAX_LANES (0 if none)."""
    best = 0
    c = 128
    while c <= min(total, _MAX_LANES):
        if total % c == 0:
            best = c
        c += 128
    return best


def _chunk_rows(n_rows: int, row_bytes: int, align: int):
    """Split [0, n_rows) into <= _MAX_DMA_CHUNKS contiguous (start, size) chunks."""
    total_bytes = n_rows * row_bytes
    if total_bytes <= _MIN_CHUNK_BYTES or n_rows <= align:
        return [(0, n_rows)]
    n_chunks = min(_MAX_DMA_CHUNKS, max(1, math.ceil(total_bytes / _MIN_CHUNK_BYTES)))
    if n_chunks <= 1:
        return [(0, n_rows)]
    base = math.ceil(n_rows / n_chunks)
    base = math.ceil(base / align) * align        # align chunk boundaries
    chunks = []
    start = 0
    while start < n_rows:
        size = min(base, n_rows - start)
        chunks.append((start, size))
        start += size
    return chunks


def _make_dma_copy_kernel(chunks, n_rows):
    """Kernel issuing one HBM->HBM async copy per static (start, size) chunk."""

    def kernel(x_hbm, o_hbm, sems):
        copies = []
        for idx, (start, size) in enumerate(chunks):
            if start == 0 and size == n_rows:
                src, dst = x_hbm, o_hbm                      # whole-array copy
            else:
                src = x_hbm.at[pl.ds(start, size)]
                dst = o_hbm.at[pl.ds(start, size)]
            cp = pltpu.make_async_copy(src, dst, sems.at[idx])
            cp.start()
            copies.append(cp)
        for cp in copies:            # start all, then wait all -> overlap
            cp.wait()

    return kernel


def tensordata_forward(x: jax.Array) -> jax.Array:
    """Pallas forward of TensorData: returns (a freshly materialized copy of) x."""
    orig_shape = x.shape
    total = x.size
    if total == 0:
        return jnp.reshape(x, orig_shape)

    itemsize = jnp.dtype(x.dtype).itemsize

    # Prefer a lane-dense 2-D view (free reshape of contiguous data); fall back
    # to a flat 1-D view for element counts not divisible by 128.  HBM->HBM DMA
    # has no (8,128) tiling constraint, so both paths are valid for any size.
    lanes = _pick_lanes(total)
    if lanes:
        rows = total // lanes
        view_shape = (rows, lanes)
        row_bytes = lanes * itemsize
        align = _SUBLANE.get(itemsize, 8)
    else:
        rows = total
        view_shape = (total,)
        row_bytes = itemsize
        align = 128

    x_view = jnp.reshape(x, view_shape)
    chunks = _chunk_rows(rows, row_bytes, align)
    kernel = _make_dma_copy_kernel(chunks, rows)

    out = pl.pallas_call(
        kernel,
        out_shape=jax.ShapeDtypeStruct(view_shape, x.dtype),
        in_specs=[pl.BlockSpec(memory_space=pl.ANY)],
        out_specs=pl.BlockSpec(memory_space=pl.ANY),
        scratch_shapes=[pltpu.SemaphoreType.DMA((len(chunks),))],
        cost_estimate=pl.CostEstimate(
            flops=0,
            transcendentals=0,
            bytes_accessed=2 * total * itemsize,
        ),
    )(x_view)
    return jnp.reshape(out, orig_shape)


class TensorData:
    """Pallas/JAX analog of the PyTorch TensorData module.

    Holds a tensor; calling the module returns it (materialized via the
    grid-less HBM->HBM DMA copy kernel).  Parameter-vs-buffer registration is
    pure PyTorch framework bookkeeping and has no kernel-level equivalent.
    """

    def __init__(self, tensor):
        self.tensor = jnp.asarray(tensor)

    def forward(self) -> jax.Array:
        return tensordata_forward(self.tensor)

    __call__ = forward


if __name__ == "__main__":
    key = jax.random.PRNGKey(0)
    # Small example consistent with a stored activation-like buffer.
    B, C, H, W = 2, 4, 16, 16
    x = jax.random.normal(key, (B, C, H, W), dtype=jnp.float32)

    mod = TensorData(x)
    out = jax.block_until_ready(mod())

    # Forward semantics: output equals the stored tensor.
    assert out.shape == x.shape and out.dtype == x.dtype
    assert bool(jnp.array_equal(out, x))

    print("KERNEL_OK")
</pallas_src>

<mosaic_0001>
module attributes {stable_mosaic.version = 11 : i64} {
  func.func @kernel(%arg0: memref<1x2048xf32, #tpu.memory_space<any>>, %arg1: memref<1x2048xf32, #tpu.memory_space<any>>, %arg2: memref<1x!tpu.dma_semaphore, #tpu.memory_space<semaphore_mem>>) attributes {dimension_semantics = [], scalar_prefetch = 0 : i64, scratch_operands = 1 : i64, tpu.core_type = #tpu.core_type<tc>} {
    %c0_i32 = arith.constant 0 : i32
    %0 = tpu.memref_slice %arg2[%c0_i32] : memref<1x!tpu.dma_semaphore, #tpu.memory_space<semaphore_mem>> -> memref<1x!tpu.dma_semaphore, #tpu.memory_space<semaphore_mem>>
    %1 = tpu.memref_squeeze %0 : memref<1x!tpu.dma_semaphore, #tpu.memory_space<semaphore_mem>> -> memref<!tpu.dma_semaphore, #tpu.memory_space<semaphore_mem>>
    tpu.enqueue_dma source(%arg0 : memref<1x2048xf32, #tpu.memory_space<any>>) target(%arg1 : memref<1x2048xf32, #tpu.memory_space<any>>) target_semaphore(%1 : memref<!tpu.dma_semaphore, #tpu.memory_space<semaphore_mem>>)
    %c0_i32_0 = arith.constant 0 : i32
    %2 = tpu.memref_slice %arg2[%c0_i32_0] : memref<1x!tpu.dma_semaphore, #tpu.memory_space<semaphore_mem>> -> memref<1x!tpu.dma_semaphore, #tpu.memory_space<semaphore_mem>>
    %3 = tpu.memref_squeeze %2 : memref<1x!tpu.dma_semaphore, #tpu.memory_space<semaphore_mem>> -> memref<!tpu.dma_semaphore, #tpu.memory_space<semaphore_mem>>
    tpu.wait_dma2 semaphore(%3 : memref<!tpu.dma_semaphore, #tpu.memory_space<semaphore_mem>>) src(%arg0 : memref<1x2048xf32, #tpu.memory_space<any>>) dst(%arg1 : memref<1x2048xf32, #tpu.memory_space<any>>)
    return
  }
}

</mosaic_0001>

<bundles_post_ra>
// kernel: tpu_custom_call.1
= control target key start
LH: loop header
LB: loop body
LE: loop exit
PB: predicated region body
PF: predicated region fallthrough
CT: control target
= control target key end

     0   :  { %s32_s12 = smov [#allocation2]   ;;  %s33_s13 = smov [#allocation3]   ;;  %s51_s0 = inlined_call_operand.hbm [shape: f32[1,2048], index: 0, kind: input, shape index: {}]   ;;  %s52_s1 = inlined_call_operand.hbm [shape: f32[1,2048], index: 1, kind: output, shape index: {}]  }
   0x1   :  { %s10_s8 = sshll.u32 %s51_s0, 4  ;;  %s12_s11 = sshll.u32 %s52_s1, 4  ;;  %s11_s8 = int_to_ptr.hbm [resolvable:$true] %s10_s8  ;;  %s13_s11 = int_to_ptr.hbm [resolvable:$true] %s12_s11 }
   0x2   :  { %s34_s14 = smov 0  }
   0x3   :  { %16 = dma.general %s11_s8, 256, %s13_s11, %s32_s12, %s33_s13, [#allocation4], %s34_s14, 0  }
   0x4   :  { %30 = dma.done.wait [#allocation2], 256 }
   0x5   :  { %31 = vsyncadd [#allocation2], 4294967040 }
   0x6   :  { %20 = vsyncmov [#allocation2] }
   0x9   :  { %s21_s15 = vpop.sfrf %20 }
   0xa   :  { %p26_p0 = scmp.ne.s32.totalorder %s21_s15, 0 }
   0xc   :  { %25 = shalt.err (%p26_p0)  }

</bundles_post_ra>
